<compile_context>
chip_gen: v7x
topology: tpu7x:2x2x1
jax: 0.10.0
libtpu: 0.0.40
codegen_flags: <defaults>
</compile_context>

<pallas_src>
import functools

import jax
import jax.numpy as jnp
from jax.experimental import pallas as pl
from jax.experimental.pallas import tpu as pltpu


def _round_up(a, b):
    return (a + b - 1) // b * b


def _medusa_fused_kernel(x_ref, rw_ref, rb_ref, wv_ref, o_ref, y_ref, *, num_layers):
    """One (head, token-tile, vocab-tile) grid step.

    x_ref  : (tT, H)  f32   input hidden-state tile (shared by every head)
    rw_ref : (H, H)   bf16  ResBlock weight, pre-transposed (h = x @ w + b)
    rb_ref : (1, H)   f32   ResBlock bias
    wv_ref : (H, tv)  bf16  vocab projection weight tile, pre-transposed
    o_ref  : (tT, tv)       output logits tile
    y_ref  : (tT, H)  bf16  VMEM scratch: per-(head, token-tile) ResBlock output
    """

    # Evaluate the (shared-weight) ResBlock stack once per (head, token-tile),
    # i.e. at vocab tile 0, then reuse the VMEM scratch for every vocab tile.
    @pl.when(pl.program_id(2) == 0)
    def _():
        w = rw_ref[...]                         # bf16 straight to the MXU
        b = rb_ref[...].astype(jnp.float32)

        def body(_, cur):                       # cur: f32 residual carry
            h = jnp.dot(cur.astype(jnp.bfloat16), w,
                        preferred_element_type=jnp.float32) + b
            # SiLU = h * sigmoid(h); the exp runs on the EUP.
            return cur + h * jax.nn.sigmoid(h)

        y = jax.lax.fori_loop(0, num_layers, body,
                              x_ref[...].astype(jnp.float32), unroll=True)
        # NOTE: y is held in bf16 (one extra rounding vs the f32 reference) to
        # halve the scratch footprint and feed the MXU natively.
        y_ref[...] = y.astype(y_ref.dtype)

    # Bias-free vocab projection for this tile: (tT, H) @ (H, tv) -> (tT, tv).
    o_ref[...] = jnp.dot(y_ref[...], wv_ref[...],
                         preferred_element_type=jnp.float32).astype(o_ref.dtype)


def _tpu_vmem_capacity():
    try:
        cap = getattr(pltpu.get_tpu_info(), "vmem_capacity_bytes", None)
    except Exception:
        cap = None
    # Fallback is 128 MiB (v5e/v6e); v7x's 64 MiB is reported by get_tpu_info.
    return int(cap) if cap else 128 * 1024 * 1024


def _vmem_limit_bytes():
    # ~7/8 of physical VMEM: ~112 MiB on v5e/v6e, ~56 MiB on v7x.
    return min(_tpu_vmem_capacity() * 7 // 8, 112 * 1024 * 1024)


def _default_tiles():
    """Generation-aware (tv, tT): v7x (64 MiB VMEM) gets narrower vocab tiles."""
    if _tpu_vmem_capacity() <= 64 * 1024 * 1024:      # v7x
        return 1024, 256
    return 2048, 256                                   # v5e / v6e (128 MiB VMEM)


def medusa_head_forward(x, resblock_w_t, resblock_b, head_w_t, *,
                        num_layers, tv=None, tT=None, out_dtype=jnp.float32):
    """Pallas MedusaHead forward.

    x            : (T, H)              float32
    resblock_w_t : (num_heads, H, H)   ResBlock weight, pre-transposed (in, out)
    resblock_b   : (num_heads, 1, H)   ResBlock bias
    head_w_t     : (num_heads, H, V)   vocab projection weight, pre-transposed
    returns      : (num_heads, T, V)   logits in `out_dtype` (bf16 halves writeback
                                       if the consumer tolerates it)
    """
    T, H = x.shape
    num_heads = resblock_w_t.shape[0]
    V = head_w_t.shape[-1]

    tv_def, tT_def = _default_tiles()
    tv = tv_def if tv is None else tv
    tT = tT_def if tT is None else tT

    # Vocab tiling: lane-dense, multiple of 128; pad V up to a tile multiple
    # (real vocab sizes like 32000 / 128256 are not multiples of the tile).
    tv = max(128, min(_round_up(tv, 128), _round_up(V, 128)))
    V_pad = _round_up(V, tv)

    # Token tiling: sublane multiple of 8; pad T up to a tile multiple so large-T
    # deployments keep x / scratch / output tiles bounded in VMEM.
    tT = max(8, min(_round_up(tT, 8), _round_up(T, 8)))
    T_pad = _round_up(T, tT)

    # Weights are streamed as bf16 (MXU-native); accumulation stays f32.
    resblock_w_t = resblock_w_t.astype(jnp.bfloat16)
    head_w_t = head_w_t.astype(jnp.bfloat16)
    resblock_b = resblock_b.astype(jnp.float32)
    x = x.astype(jnp.float32)

    if V_pad != V:
        head_w_t = jnp.pad(head_w_t, ((0, 0), (0, 0), (0, V_pad - V)))
    if T_pad != T:
        x = jnp.pad(x, ((0, T_pad - T), (0, 0)))

    grid = (num_heads, T_pad // tT, V_pad // tv)

    out = pl.pallas_call(
        functools.partial(_medusa_fused_kernel, num_layers=num_layers),
        out_shape=jax.ShapeDtypeStruct((num_heads, T_pad, V_pad), out_dtype),
        grid=grid,
        in_specs=[
            # x tile: only changes with the token-tile index; single-buffered
            # (a second pipeline buffer would be pure VMEM waste).
            pl.BlockSpec((tT, H), lambda h, t, v: (t, 0),
                         pipeline_mode=pl.Buffered(1)),
            # ResBlock weight: only consumed at v == 0; single-buffered so the
            # (H, H) bf16 block (32 MiB at H=4096) is never held twice — this is
            # what lets a reasonable tv fit under v7x's 64 MiB VMEM.
            pl.BlockSpec((None, H, H), lambda h, t, v: (h, 0, 0),
                         pipeline_mode=pl.Buffered(1)),
            pl.BlockSpec((None, 1, H), lambda h, t, v: (h, 0, 0)),
            # Vocab projection tile: the dominant HBM stream; keep default
            # depth-2 pipelining so the DMA overlaps the MXU.
            pl.BlockSpec((None, H, tv), lambda h, t, v: (h, 0, v)),
        ],
        out_specs=pl.BlockSpec((None, tT, tv), lambda h, t, v: (h, t, v)),
        scratch_shapes=[pltpu.VMEM((tT, H), jnp.bfloat16)],
        compiler_params=pltpu.CompilerParams(
            # Vocab axis must stay "arbitrary": the scratch carries the ResBlock
            # output across the vocab tiles of a given (head, token-tile).
            # Head & token axes are "parallel" for megacore / v7x sharding.
            dimension_semantics=("parallel", "parallel", "arbitrary"),
            vmem_limit_bytes=_vmem_limit_bytes(),
        ),
    )(x, resblock_w_t, resblock_b, head_w_t)

    if T_pad != T or V_pad != V:
        out = out[:, :T, :V]
    return out


def medusa_head_reference(x, resblock_w_t, resblock_b, head_w_t, *, num_layers):
    """Pure-JAX reference matching the PyTorch forward (f32 math, same weights)."""
    outs = []
    for h in range(resblock_w_t.shape[0]):
        cur = x.astype(jnp.float32)
        w = resblock_w_t[h].astype(jnp.float32)
        b = resblock_b[h, 0].astype(jnp.float32)
        for _ in range(num_layers):  # same ResBlock object repeated -> shared weights
            z = cur @ w + b
            cur = cur + z * jax.nn.sigmoid(z)
        outs.append(cur @ head_w_t[h].astype(jnp.float32))
    return jnp.stack(outs, axis=0)


if __name__ == "__main__":
    # Small config consistent with MedusaHead: hidden = size_per_head * head_num,
    # T tokens of hidden states in, (num_heads, T, vocab) logits out.
    # T and VOCAB are deliberately not tile multiples to exercise the padding path.
    T = 10                # tokens (batch * seq)  -> padded to 16
    HIDDEN = 128          # size_per_head * head_num
    VOCAB = 1000          # -> padded to 1024; 2 vocab tiles at tv=512
    NUM_HEADS = 2         # medusa_num_heads
    NUM_LAYERS = 2        # medusa_num_layers (all layers of a head share one ResBlock)

    key = jax.random.PRNGKey(0)
    kx, kw, kb, kv = jax.random.split(key, 4)

    x = jax.random.normal(kx, (T, HIDDEN), dtype=jnp.float32)
    # NOTE: PyTorch init zeros the ResBlock weight; small random weights are used
    # here so the residual path is exercised (semantics are identical).
    # Weights are stored as bf16 — the form the kernel streams from HBM.
    resblock_w_t = (0.02 * jax.random.normal(
        kw, (NUM_HEADS, HIDDEN, HIDDEN), jnp.float32)).astype(jnp.bfloat16)
    resblock_b = (0.02 * jax.random.normal(
        kb, (NUM_HEADS, 1, HIDDEN), jnp.float32)).astype(jnp.float32)
    head_w_t = (0.02 * jax.random.normal(
        kv, (NUM_HEADS, HIDDEN, VOCAB), jnp.float32)).astype(jnp.bfloat16)

    # tv=512 forces 2 vocab tiles even at this toy vocab so the scratch-reuse
    # (v > 0) path runs; production shapes should use the auto (generation-aware)
    # default — this demo does not exercise the HBM-bound regime.
    out = medusa_head_forward(
        x, resblock_w_t, resblock_b, head_w_t, num_layers=NUM_LAYERS, tv=512)
    out = jax.block_until_ready(out)

    ref = medusa_head_reference(
        x, resblock_w_t, resblock_b, head_w_t, num_layers=NUM_LAYERS)

    assert out.shape == (NUM_HEADS, T, VOCAB), out.shape
    # bf16 operand / scratch rounding (f32 accumulation) -> loosened tolerance.
    assert jnp.allclose(out, ref, atol=1e-2, rtol=1e-2), float(
        jnp.max(jnp.abs(out - ref)))

    print("KERNEL_OK")
</pallas_src>

<mosaic_0001>
module attributes {stable_mosaic.version = 11 : i64} {
  func.func @_medusa_fused_kernel(%arg0: i32, %arg1: i32, %arg2: i32, %arg3: memref<16x128xf32, #tpu.memory_space<vmem>>, %arg4: memref<1x128x128xbf16, #tpu.memory_space<vmem>>, %arg5: memref<1x1x128xf32, #tpu.memory_space<vmem>>, %arg6: memref<1x128x512xbf16, #tpu.memory_space<vmem>>, %arg7: memref<1x16x512xf32, #tpu.memory_space<vmem>>, %arg8: memref<16x128xbf16, #tpu.memory_space<vmem>>) attributes {dimension_semantics = [#tpu.dimension_semantics<parallel>, #tpu.dimension_semantics<parallel>, #tpu.dimension_semantics<arbitrary>], iteration_bounds = array<i64: 2, 1, 2>, scalar_prefetch = 0 : i64, scratch_operands = 1 : i64, tpu.core_type = #tpu.core_type<tc>, window_params = [{pipeline_mode = #tpu.pipeline_mode<synchronous>, transform_indices = @transform_0, window_bounds = array<i64: 16, 128>}, {pipeline_mode = #tpu.pipeline_mode<synchronous>, transform_indices = @transform_1, window_bounds = array<i64: 1, 128, 128>}, {transform_indices = @transform_2, window_bounds = array<i64: 1, 1, 128>}, {transform_indices = @transform_3, window_bounds = array<i64: 1, 128, 512>}, {transform_indices = @transform_4, window_bounds = array<i64: 1, 16, 512>}]} {
    %c0_i32 = arith.constant 0 : i32
    %0 = arith.cmpi eq, %arg2, %c0_i32 : i32
    %1 = arith.extui %0 : i1 to i32
    %c0_i32_0 = arith.constant 0 : i32
    %2 = arith.cmpi ne, %1, %c0_i32_0 : i32
    scf.if %2 {
      %c0_8 = arith.constant 0 : index
      %c0_9 = arith.constant 0 : index
      %c0_10 = arith.constant 0 : index
      %10 = vector.load %arg4[%c0_8, %c0_9, %c0_10] : memref<1x128x128xbf16, #tpu.memory_space<vmem>>, vector<1x128x128xbf16>
      %11 = vector.shape_cast %10 : vector<1x128x128xbf16> to vector<128x128xbf16>
      %c0_11 = arith.constant 0 : index
      %c0_12 = arith.constant 0 : index
      %c0_13 = arith.constant 0 : index
      %12 = vector.load %arg5[%c0_11, %c0_12, %c0_13] : memref<1x1x128xf32, #tpu.memory_space<vmem>>, vector<1x1x128xf32>
      %13 = vector.shape_cast %12 : vector<1x1x128xf32> to vector<1x128xf32>
      %c0_14 = arith.constant 0 : index
      %c0_15 = arith.constant 0 : index
      %14 = vector.load %arg3[%c0_14, %c0_15] : memref<16x128xf32, #tpu.memory_space<vmem>>, vector<16x128xf32>
      %c0_i32_16 = arith.constant 0 : i32
      %15 = arith.truncf %14 : vector<16x128xf32> to vector<16x128xbf16>
      %cst_17 = arith.constant dense<0.000000e+00> : vector<16x128xf32>
      %16 = tpu.matmul %15, %11, %cst_17 {dimension_numbers = #tpu.dot_dimension_numbers<[1], [0], [0], [1], [0, 0, 1, 1], [], []>} : vector<16x128xbf16>, vector<128x128xbf16>, vector<16x128xf32> -> vector<16x128xf32>
      %17 = vector.broadcast %13 : vector<1x128xf32> to vector<16x128xf32>
      %18 = arith.addf %16, %17 : vector<16x128xf32>
      %19 = arith.negf %18 : vector<16x128xf32>
      %20 = math.exp %19 : vector<16x128xf32>
      %cst_18 = arith.constant 1.000000e+00 : f32
      %21 = vector.broadcast %cst_18 : f32 to vector<16x128xf32>
      %22 = arith.addf %21, %20 : vector<16x128xf32>
      %23 = arith.divf %21, %22 : vector<16x128xf32>
      %24 = arith.mulf %18, %23 : vector<16x128xf32>
      %25 = arith.addf %14, %24 : vector<16x128xf32>
      %c1_i32 = arith.constant 1 : i32
      %26 = arith.truncf %25 : vector<16x128xf32> to vector<16x128xbf16>
      %cst_19 = arith.constant dense<0.000000e+00> : vector<16x128xf32>
      %27 = tpu.matmul %26, %11, %cst_19 {dimension_numbers = #tpu.dot_dimension_numbers<[1], [0], [0], [1], [0, 0, 1, 1], [], []>} : vector<16x128xbf16>, vector<128x128xbf16>, vector<16x128xf32> -> vector<16x128xf32>
      %28 = vector.broadcast %13 : vector<1x128xf32> to vector<16x128xf32>
      %29 = arith.addf %27, %28 : vector<16x128xf32>
      %30 = arith.negf %29 : vector<16x128xf32>
      %31 = math.exp %30 : vector<16x128xf32>
      %cst_20 = arith.constant 1.000000e+00 : f32
      %32 = vector.broadcast %cst_20 : f32 to vector<16x128xf32>
      %33 = arith.addf %32, %31 : vector<16x128xf32>
      %34 = arith.divf %32, %33 : vector<16x128xf32>
      %35 = arith.mulf %29, %34 : vector<16x128xf32>
      %36 = arith.addf %25, %35 : vector<16x128xf32>
      %37 = arith.truncf %36 : vector<16x128xf32> to vector<16x128xbf16>
      %c0_21 = arith.constant 0 : index
      %c0_22 = arith.constant 0 : index
      %38 = vector.load %arg8[%c0_21, %c0_22] : memref<16x128xbf16, #tpu.memory_space<vmem>>, vector<16x128xbf16>
      tpu.vector_store %arg8[%c0_21, %c0_22], %37 {strides = array<i32>} : memref<16x128xbf16, #tpu.memory_space<vmem>>, vector<16x128xbf16>,
    } else {
    }
    %c0 = arith.constant 0 : index
    %c0_1 = arith.constant 0 : index
    %3 = vector.load %arg8[%c0, %c0_1] : memref<16x128xbf16, #tpu.memory_space<vmem>>, vector<16x128xbf16>
    %c0_2 = arith.constant 0 : index
    %c0_3 = arith.constant 0 : index
    %c0_4 = arith.constant 0 : index
    %4 = vector.load %arg6[%c0_2, %c0_3, %c0_4] : memref<1x128x512xbf16, #tpu.memory_space<vmem>>, vector<1x128x512xbf16>
    %5 = vector.shape_cast %4 : vector<1x128x512xbf16> to vector<128x512xbf16>
    %cst = arith.constant dense<0.000000e+00> : vector<16x512xf32>
    %6 = tpu.matmul %3, %5, %cst {dimension_numbers = #tpu.dot_dimension_numbers<[1], [0], [0], [1], [0, 0, 1, 1], [], []>} : vector<16x128xbf16>, vector<128x512xbf16>, vector<16x512xf32> -> vector<16x512xf32>
    %c0_5 = arith.constant 0 : index
    %c0_6 = arith.constant 0 : index
    %c0_7 = arith.constant 0 : index
    %7 = vector.load %arg7[%c0_5, %c0_6, %c0_7] : memref<1x16x512xf32, #tpu.memory_space<vmem>>, vector<1x16x512xf32>
    %8 = vector.shape_cast %7 : vector<1x16x512xf32> to vector<16x512xf32>
    %9 = vector.shape_cast %6 : vector<16x512xf32> to vector<1x16x512xf32>
    tpu.vector_store %arg7[%c0_5, %c0_6, %c0_7], %9 {strides = array<i32>} : memref<1x16x512xf32, #tpu.memory_space<vmem>>, vector<1x16x512xf32>,
    return
  }
  func.func @transform_0(%arg0: i32, %arg1: i32, %arg2: i32) -> (i32, i32) {
    %c0_i32 = arith.constant 0 : i32
    %c0_i32_0 = arith.constant 0 : i32
    return %arg1, %c0_i32 : i32, i32
  }
  func.func @transform_1(%arg0: i32, %arg1: i32, %arg2: i32) -> (i32, i32, i32) {
    %c0_i32 = arith.constant 0 : i32
    %c0_i32_0 = arith.constant 0 : i32
    %c0_i32_1 = arith.constant 0 : i32
    return %arg0, %c0_i32, %c0_i32_0 : i32, i32, i32
  }
  func.func @transform_2(%arg0: i32, %arg1: i32, %arg2: i32) -> (i32, i32, i32) {
    %c0_i32 = arith.constant 0 : i32
    %c0_i32_0 = arith.constant 0 : i32
    %c0_i32_1 = arith.constant 0 : i32
    return %arg0, %c0_i32, %c0_i32_0 : i32, i32, i32
  }
  func.func @transform_3(%arg0: i32, %arg1: i32, %arg2: i32) -> (i32, i32, i32) {
    %c0_i32 = arith.constant 0 : i32
    %c0_i32_0 = arith.constant 0 : i32
    return %arg0, %c0_i32, %arg2 : i32, i32, i32
  }
  func.func @transform_4(%arg0: i32, %arg1: i32, %arg2: i32) -> (i32, i32, i32) {
    %c0_i32 = arith.constant 0 : i32
    return %arg0, %arg1, %arg2 : i32, i32, i32
  }
}

</mosaic_0001>

<bundles_post_ra>
// kernel: tpu_custom_call.1
= control target key start
LH: loop header
LB: loop body
LE: loop exit
PB: predicated region body
PF: predicated region fallthrough
CT: control target
= control target key end

     0   :  { %s2009_s0 = inlined_call_operand.hbm [shape: f32[16,128], index: 0, kind: input, shape index: {}]   ;;  %s2010_s1 = inlined_call_operand.hbm [shape: bf16[2,128,128], index: 1, kind: input, shape index: {}]   ;;  %s2011_s2 = inlined_call_operand.hbm [shape: f32[2,1,128], index: 2, kind: input, shape index: {}]   ;;  %s2012_s3 = inlined_call_operand.hbm [shape: bf16[2,128,1024], index: 3, kind: input, shape index: {}]   ;;  %s2013_s4 = inlined_call_operand.hbm [shape: f32[2,16,1024], index: 4, kind: output, shape index: {}]  }
   0x1   :  { %2033 = sst [smem:[#allocation24_spill]] %s2009_s0 }
   0x2   :  { %2034 = sst [smem:[#allocation25_spill]] %s2010_s1 }
   0x3   :  { %2035 = sst [smem:[#allocation26_spill]] %s2011_s2 }
   0x4   :  { %2036 = sst [smem:[#allocation27_spill]] %s2013_s4 }
   0x5   :  { %9 = vsyncpa [#allocation4], 0 }
   0x6   :  { %10 = vsyncpa [#allocation7], 0 }
   0x7   :  { %11 = vsyncpa [#allocation5], 0 }
   0x8   :  { %13 = vsyncpa [#allocation5 + $0x1], 0  ;;  %s1591_s15 = smov 0   ;;  %s1593_s16 = smov 0  }
   0x9   :  { %s1595_s17 = smov 0   ;;  %s1597_s18 = smov 0  }
   0xa   :  { %s1599_s19 = smov 0   ;;  %s1601_s20 = smov 0  }
   0xb   :  { %s1603_s21 = smov 0   ;;  %s1605_s22 = smov 0  }
   0xc   :  { %s1607_s23 = smov 0   ;;  %s1609_s24 = smov 0  }
   0xd   :  { %s1611_s25 = smov 0  }
   0xe LB: > { %2037 = sst [smem:[#allocation16_spill]] %s1506_s15  ;;  %s1645_s26 = sadd.s32 4294967295, %s1546_s25   ;;  %s1546_s25 = sphi %s1611_s25, %s19_s25   ;;  %s1542_s24 = sphi %s1609_s24, %s2090_s24   ;;  %s1538_s23 = sphi %s1607_s23, %s2089_s23   ;;  %s1534_s22 = sphi %s1605_s22, %s2088_s22   ;;  %s1530_s21 = sphi %s1603_s21, %s2087_s21   ;;  %s1526_s20 = sphi %s1601_s20, %s2086_s20   ;;  %s1522_s19 = sphi %s1599_s19, %s2085_s19   ;;  %s1518_s18 = sphi %s1597_s18, %s2084_s18   ;;  %s1514_s17 = sphi %s1595_s17, %s2083_s17   ;;  %s1510_s16 = sphi %s1593_s16, %s2082_s16   ;;  %s1506_s15 = sphi %s1591_s15, %s2081_s15  }
   0xf   : > { %2038 = sst [smem:[#allocation17_spill]] %s1510_s16  ;;  %s959_s27 = sadd.s32 4294967294, %s1546_s25  }
  0x10   : > { %2039 = sst [smem:[#allocation18_spill]] %s1530_s21  ;;  %p84_p0 = scmp.ne.s32.totalorder %s1522_s19, %s1518_s18 }
  0x11   : > { %p2014_p1 = scmp.eq.s32.totalorder %s1645_s26, 0  ;;  %p2016_p2 = scmp.ne.s32.totalorder %s1514_s17, %s1510_s16 }
  0x12   : > { %p138_p3 = scmp.ne.s32.totalorder %s1510_s16, %s1506_s15  ;;  %p166_p5 = scmp.eq.s32.totalorder %s1645_s26, 3 }
  0x13   : > { %p1656_p4 = por %p2014_p1, %p84_p0  ;;  %p172_p7 = scmp.eq.s32.totalorder %s959_s27, 3 }
  0x14   : > { %p1663_p6 = por %p138_p3, %p2014_p1  ;;  %p1670_p8 = por %p166_p5, %p2016_p2 }
  0x15   : > { %s2040_s28 = scalar_select %p1656_p4, 1, 0 }
  0x16   : > { %s2041_s29 = scalar_select %p1663_p6, 1, 0 }
  0x17   : > { %s2043_s30 = scalar_select %p1670_p8, 1, 0 }
  0x18   : > { %2042 = sst [smem:[#allocation19_spill]] %s2041_s29  ;;  %p960_p9 = scmp.ge.s32.totalorder %s1546_s25, 1 }
  0x19   : > { %2044 = sst [smem:[#allocation20_spill]] %s2043_s30  ;;  %p1675_p10 = por %p172_p7, %p138_p3 }
  0x1a   : > { %p179_p11 = scmp.lt.s32.totalorder %s1546_s25, 5  ;;  %s1548_s7 = smov [#allocation3]  }
  0x1b   : > { %s2045_s5 = scalar_select %p1675_p10, 1, 0 }
  0x1c   : > { %p1680_p12 = pnand %p960_p9, %p179_p11  ;;  %s194_s8 = sshll.u32 %s1548_s7, 4  ;;  %s195_s8 = int_to_ptr.vmem [resolvable:$true] %s194_s8 }
  0x1d   : > { %2046 = sst [smem:[#allocation21_spill]] %s2045_s5  ;;  %s2050_s0 = sld [smem:[#allocation24_spill]] }
  0x1e   : > { %s2047_s6 = scalar_select %p1680_p12, 1, 0 }
  0x1f   : > { %p1097_p13 = pneg %p1680_p12 }
  0x21   : > { %p1688_p0 = pnand %p1097_p13, %p2014_p1  ;;  %p1694_p3 = pnand %p1097_p13, %p1656_p4 }
  0x23   : > { %s2049_s10 = scalar_select %p1694_p3, 1, 0 }
  0x24   : > { %s1294_s13 = scalar_lea.hbm %s2050_s0, 256  ;;  %p1296_p7 = pneg %p1688_p0 }
  0x25   : > { %p1295_p5 = scmp.ne.s32.totalorder %s2050_s0, %s1294_s13  ;;  %p1301_p1 = scmp.lt.u32.totalorder %s1294_s13, %s2050_s0 }
  0x27   : > { %p1297_p9 = pnand %p1296_p7, %p1295_p5 }
  0x29   : > { %p1298_p11 = pneg %p1297_p9 }
  0x2b   : > { %p1303_p13 = pnand %p1301_p1, %p1298_p11 }
  0x2d   : > { %1306 = shalt.err (!%p1303_p13)
}
  0x2e   : > { %s1307_s5 = scalar_lea.vmem %s195_s8, 256  ;;  %p1315_p6 = scmp.lt.s32.totalorder %s195_s8, %s195_s8 }
  0x2f   : > { %p1308_p2 = scmp.ne.s32.totalorder %s195_s8, %s1307_s5  ;;  %p1316_p4 = scmp.lt.s32.totalorder %s1307_s5, %s1307_s5 }
  0x31   : > { %p1310_p10 = pnand %p1308_p2, %p1296_p7  ;;  %p1317_p12 = por %p1316_p4, %p1315_p6 }
  0x33   : > { %p1311_p8 = pneg %p1310_p10 }
  0x35   : > { %p1318_p3 = pnand %p1317_p12, %p1311_p8 }
  0x37   : > { %1321 = shalt.err (!%p1318_p3)
}
  0x38   : > { %s1549_s11 = smov 128   ;;  %s1550_s12 = smov 8  }
  0x39   : > { %1100 = dma.hbm_to_vmem [thread:$0]  (!%p1688_p0), %s2050_s0, 256, %s195_s8, [#allocation4], %s1549_s11, %s1549_s11, %s1550_s12  }
  0x3a   : > { %s31_s14 = sadd.s32 1, %s1538_s23  ;;  %s38_s18 = sadd.s32 1, %s1542_s24 }
  0x3b   : > { %p32_p1 = scmp.ge.s32.totalorder %s31_s14, 2  ;;  %s71_s27 = sadd.s32 1, %s1526_s20 }
  0x3c   : > { %p104_p2 = scmp.ne.s32.totalorder %s1526_s20, %s1522_s19  ;;  %p105_p4 = scmp.eq.s32.totalorder %s1546_s25, 0 }
  0x3d   : > { %s2092_s14 = smov (%p32_p1, %s31_s14), 0  ;;  %s2094_s18 = smov (!%p32_p1, %s38_s18), %s1542_s24 }
  0x3e   : > { %2051 = sst [smem:[#allocation22_spill]] %s2092_s14  ;;  %s121_s9 = ssub.s32 %s1538_s23, %s2092_s14 }
  0x3f   : > { %p40_p6 = scmp.ge.s32.totalorder %s2094_s18, 2  ;;  %s125_s7 = sadd.s32 1, %s1514_s17 }
  0x40   : > { %p1726_p8 = por %p105_p4, %p104_p2  ;;  %p2053_p10 = scmp.ne.s32.totalorder %s1514_s17, %s1510_s16 }
  0x41   : > { %s2096_s18 = smov (%p40_p6, %s2094_s18), 0  ;;  %p1116_p0 = scmp.lt.s32.totalorder %s1546_s25, 4 }
  0x42   : > { %p1733_p12 = por %p2053_p10, %p105_p4  ;;  %2055 = sst [smem:[#allocation23_spill]] %s2096_s18 }
  0x43   : > { %s224_s12 = sand.u32 1, %s1546_s25   ;;  %s68_s13 = ssub.s32 %s1542_s24, %s2096_s18 }
  0x44   : > { %p69_p3 = scmp.eq.s32.totalorder %s68_s13, 0  ;;  %s122_s5 = sor.u32 %s121_s9, %s68_s13 }
  0x45   : > { %p123_p5 = scmp.eq.s32.totalorder %s122_s5, 0  ;;  %s226_s0 = sand.u32 1, %s1526_s20  }
  0x46   : > { %s1745_s14 = scalar_select %p69_p3, %s1526_s20, %s71_s27  }
  0x47   : > { %s1748_s15 = scalar_select %p123_p5, %s1514_s17, %s125_s7  }
  0x48   : > { %s965_s30 = sshll.u32 %s1542_s24, 4  ;;  %s2056_s2 = sld [smem:[#allocation26_spill]] }
  0x49   : > { %s227_s16 = scalar_lea.vmem [#allocation8], %s226_s0  ;;  %p1762_p7 = pnand %p1116_p0, %p1726_p8 }
  0x4a   : > { %s234_s18 = sshll.u32 %s227_s16, 4  ;;  %p1770_p9 = pnand %p1116_p0, %p1733_p12  ;;  %s1756_s18 = int_to_ptr.vmem [resolvable:$true] %s234_s18 }
  0x4b   : > { %s1774_s21 = scalar_lea.sflag [#allocation4], %s224_s12  ;;  %p1324_p13 = pneg %p1762_p7 }
  0x4c   : > { %s2058_s4 = scalar_select %p1770_p9, 1, 0 }
  0x4e   : > { %s1754_s29 = scalar_lea.hbm %s2056_s2, %s965_s30  ;;  %s1327_s9 = scalar_lea.hbm %s2056_s2, 32 }
  0x4f   : > { %s1322_s0 = scalar_lea.hbm %s1754_s29, 16  ;;  %p1328_p4 = scmp.lt.u32.totalorder %s1754_s29, %s2056_s2 }
  0x50   : > { %p1323_p11 = scmp.ne.s32.totalorder %s1754_s29, %s1322_s0  ;;  %p1329_p6 = scmp.lt.u32.totalorder %s1327_s9, %s1322_s0 }
  0x51   : > { %p1331_p10 = scmp.lt.u32.totalorder %s1322_s0, %s1754_s29 }
  0x52   : > { %p1325_p1 = pnand %p1324_p13, %p1323_p11  ;;  %p1330_p8 = por %p1329_p6, %p1328_p4 }
  0x54   : > { %p1326_p2 = pneg %p1325_p1  ;;  %p1332_p12 = por %p1331_p10, %p1330_p8 }
  0x56   : > { %p1333_p0 = pnand %p1332_p12, %p1326_p2 }
  0x58   : > { %1336 = shalt.err (!%p1333_p0)
}
  0x59   : > { %s1337_s11 = scalar_lea.vmem %s1756_s18, 16  ;;  %s1551_s12 = smov [#allocation8]  }
  0x5a   : > { %p1338_p3 = scmp.ne.s32.totalorder %s1756_s18, %s1337_s11  ;;  %s1342_s13 = sshll.u32 %s1551_s12, 4  ;;  %s1343_s13 = int_to_ptr.vmem [resolvable:$false] %s1342_s13 }
  0x5b   : > { %s1344_s5 = scalar_lea.vmem %s1343_s13, 32  ;;  %p1345_p1 = scmp.lt.s32.totalorder %s1756_s18, %s1343_s13 }
  0x5c   : > { %p1340_p5 = pnand %p1338_p3, %p1324_p13  ;;  %p1346_p4 = scmp.lt.s32.totalorder %s1344_s5, %s1337_s11 }
  0x5e   : > { %p1341_p11 = pneg %p1340_p5  ;;  %p1347_p6 = por %p1346_p4, %p1345_p1 }
  0x60   : > { %p1348_p8 = pnand %p1347_p6, %p1341_p11 }
  0x62   : > { %1351 = shalt.err (!%p1348_p8)
}
  0x63   : > { %1107 = dma.hbm_to_vmem [thread:$0]  (!%p1762_p7), %s1754_s29, 16, %s1756_s18, %s1774_s21  }
  0x64   : > { %s1026_s0 = sshll.u32 %s1534_s22, 10  ;;  %s2059_s1 = sld [smem:[#allocation25_spill]] }
  0x65   : > { %s1552_s7 = smov [#allocation6]   ;;  %p2060_p2 = scmp.ne.s32.totalorder %s2049_s10, 0 }
  0x66   : > { %s210_s8 = sshll.u32 %s1552_s7, 4  ;;  %s211_s8 = int_to_ptr.vmem [resolvable:$true] %s210_s8 }
  0x67   : > { %p1354_p10 = pneg %p2060_p2 }
  0x6a   : > { %s1806_s9 = scalar_lea.hbm %s2059_s1, %s1026_s0  ;;  %s1357_s11 = scalar_lea.hbm %s2059_s1, 2048 }
  0x6b   : > { %s1352_s27 = scalar_lea.hbm %s1806_s9, 1024  ;;  %p1358_p0 = scmp.lt.u32.totalorder %s1806_s9, %s2059_s1 }
  0x6c   : > { %p1353_p13 = scmp.ne.s32.totalorder %s1806_s9, %s1352_s27  ;;  %p1359_p3 = scmp.lt.u32.totalorder %s1357_s11, %s1352_s27 }
  0x6d   : > { %p1361_p11 = scmp.lt.u32.totalorder %s1352_s27, %s1806_s9 }
  0x6e   : > { %p1355_p7 = pnand %p1354_p10, %p1353_p13  ;;  %p1360_p5 = por %p1359_p3, %p1358_p0 }
  0x70   : > { %p1356_p12 = pneg %p1355_p7  ;;  %p1362_p1 = por %p1361_p11, %p1360_p5 }
  0x72   : > { %p1363_p4 = pnand %p1362_p1, %p1356_p12 }
  0x74   : > { %1366 = shalt.err (!%p1363_p4)
}
  0x75   : > { %s1367_s5 = scalar_lea.vmem %s211_s8, 1024  ;;  %p1375_p7 = scmp.lt.s32.totalorder %s211_s8, %s211_s8 }
  0x76   : > { %p1368_p6 = scmp.ne.s32.totalorder %s211_s8, %s1367_s5  ;;  %p1376_p9 = scmp.lt.s32.totalorder %s1367_s5, %s1367_s5 }
  0x78   : > { %p1370_p8 = pnand %p1368_p6, %p1354_p10  ;;  %p1377_p0 = por %p1376_p9, %p1375_p7 }
  0x7a   : > { %p1371_p13 = pneg %p1370_p8 }
  0x7c   : > { %p1378_p3 = pnand %p1377_p0, %p1371_p13 }
  0x7e   : > { %1381 = shalt.err (!%p1378_p3)
}
  0x7f   : > { %s1553_s0 = smov 64   ;;  %s1554_s16 = smov 4  }
  0x80   : > { %1103 = dma.hbm_to_vmem [thread:$0]  (!%p2060_p2), %s1806_s9, 1024, %s211_s8, [#allocation7], %s1553_s0, %s1553_s0, %s1554_s16  }
  0x81   : > { %s243_s30 = sand.u32 1, %s1514_s17   ;;  %s967_s7 = sshll.u32 %s1538_s23, 2 }
  0x82   : > { %s966_s27 = sshll.u32 %s243_s30, 8  ;;  %s968_s29 = sshll.u32 %s1542_s24, 7 }
  0x83   : > { %s251_s18 = sadd.s32 %s968_s29, %s967_s7  ;;  %s245_s12 = scalar_lea.vmem [#allocation9], %s966_s27 }
  0x84   : > { %s969_s11 = sshll.u32 %s251_s18, 6  ;;  %s254_s13 = sshll.u32 %s245_s12, 4  ;;  %s1837_s13 = int_to_ptr.vmem [resolvable:$true] %s254_s13 }
  0x85   : > { %s1835_s2 = scalar_lea.hbm %s2012_s3, %s969_s11  ;;  %p2061_p2 = scmp.ne.s32.totalorder %s2058_s4, 0 }
  0x86   : > { %s1382_s10 = scalar_lea.hbm %s1835_s2, 4096  ;;  %s1387_s1 = scalar_lea.hbm %s2012_s3, 16384 }
  0x87   : > { %p1383_p9 = scmp.ne.s32.totalorder %s1835_s2, %s1382_s10  ;;  %p1384_p10 = pneg %p2061_p2 }
  0x88   : > { %p1388_p11 = scmp.lt.u32.totalorder %s1835_s2, %s2012_s3  ;;  %p1389_p1 = scmp.lt.u32.totalorder %s1387_s1, %s1382_s10 }
  0x89   : > { %p1385_p12 = pnand %p1384_p10, %p1383_p9  ;;  %p1391_p6 = scmp.lt.u32.totalorder %s1382_s10, %s1835_s2 }
  0x8a   : > { %p1390_p4 = por %p1389_p1, %p1388_p11 }
  0x8b   : > { %p1386_p5 = pneg %p1385_p12 }
  0x8c   : > { %p1392_p8 = por %p1391_p6, %p1390_p4 }
  0x8e   : > { %p1393_p13 = pnand %p1392_p8, %p1386_p5 }
  0x90   : > { %1396 = shalt.err (!%p1393_p13)
}
  0x91   : > { %s1397_s30 = scalar_lea.vmem %s1837_s13, 4096  ;;  %s1555_s7 = smov [#allocation9]  }
  0x92   : > { %p1398_p7 = scmp.ne.s32.totalorder %s1837_s13, %s1397_s30  ;;  %s1402_s27 = sshll.u32 %s1555_s7, 4  ;;  %s1403_s27 = int_to_ptr.vmem [resolvable:$false] %s1402_s27 }
  0x93   : > { %s1404_s29 = scalar_lea.vmem %s1403_s27, 8192  ;;  %p1405_p9 = scmp.lt.s32.totalorder %s1837_s13, %s1403_s27 }
  0x94   : > { %p1400_p0 = pnand %p1398_p7, %p1384_p10  ;;  %p1406_p12 = scmp.lt.s32.totalorder %s1404_s29, %s1397_s30 }
  0x96   : > { %p1401_p3 = pneg %p1400_p0  ;;  %p1407_p11 = por %p1406_p12, %p1405_p9 }
  0x98   : > { %p1408_p1 = pnand %p1407_p11, %p1401_p3 }
  0x9a   : > { %1411 = shalt.err (!%p1408_p1)
}
  0x9b   : > { %s1556_s18 = smov 512   ;;  %s1557_s11 = smov 256  }
  0x9c   : > { %s1558_s12 = smov 16   ;;  %p2062_p10 = scmp.ne.s32.totalorder %s2047_s6, 0 }
  0x9d   : > { %1110 = dma.hbm_to_vmem [thread:$0]  (!%p2061_p2), %s1835_s2, 4096, %s1837_s13, %s1774_s21, %s1556_s18, %s1557_s11, %s1558_s12  }
  0x9e   : > { %266 = sbr.rel (%p2062_p10) target bundleno = 984 (0x3d8), region = 36  ;;  %p2063_p5 = scmp.eq.s32.totalorder (!%p2062_p10), %s1645_s26, 0 }
  0xa5   : > { %1485 = dma.done.wait (%p2063_p5), [#allocation4], 256   ;;  %p2064_p4 = pmov %p2063_p5 }
  0xa6   : > { %p2065_p6 = scmp.ne.s32.totalorder %s2040_s28, 0 }
  0xa7   : > { %1487 = vsyncadd (%p2064_p4), [#allocation4], 4294967040 }
  0xa8   : > { %1489 = dma.done.wait (%p2065_p6), [#allocation7], 1024  }
  0xa9   : > { %1491 = vsyncadd (%p2065_p6), [#allocation7], 4294966272  ;;  %s276_s4 = sand.u32 1, %s1645_s26   ;;  %s278_s2 = sand.u32 1, %s1522_s19  }
  0xaa   : > { %s277_s21 = scalar_lea.sflag [#allocation4], %s276_s4  ;;  %s1877_s6 = scalar_lea.vmem [#allocation8], %s278_s2 }
  0xab   : > { %1493 = dma.done.wait (%p2065_p6), %s277_s21, 16  }
  0xac   : > { %1495 = vsyncadd (%p2065_p6), %s277_s21, 4294967280  ;;  %s2066_s13 = sld [smem:[#allocation17_spill]]  ;;  %s2067_s5 = sld [smem:[#allocation19_spill]] }
  0xb2   : > { %s1884_s10 = sand.u32 1, %s2066_s13   ;;  %p2068_p2 = scmp.ne.s32.totalorder %s2067_s5, 0 }
  0xb3   : > { %s972_s9 = sshll.u32 %s1884_s10, 8 }
  0xb4   : > { %s1887_s8 = scalar_lea.vmem [#allocation9], %s972_s9 }
  0xb5   : > { %1497 = dma.done.wait (%p2068_p2), %s277_s21, 4096  }
  0xb6   : > { %1499 = vsyncadd (%p2068_p2), %s277_s21, 4294963200  ;;  %s973_s26 = sshll.u32 %s1884_s10, 6  ;;  %s2069_s0 = sld [smem:[#allocation18_spill]] }
  0xb7   : > { %s1894_s1 = scalar_lea.vmem [#allocation10], %s973_s26 }
  0xbc   : > { %p974_p8 = scmp.ne.s32.totalorder %s2069_s0, 0 }
  0xbd   : > { %v1222_v0 = vld [vmem:[#allocation6] sm:$0xff] (!%p974_p8)   ;;  %v1559_v1 = vmov (!%p974_p8), 0.0   ;;  %v1223_v2 = vld [vmem:[#allocation6 + $0x8] sm:$0xff] (!%p974_p8)   ;;  %vm1560_vm0 = vmmov (!%p974_p8), 0   ;;  %v1224_v3 = vld [vmem:[#allocation6 + $0x10] sm:$0xff] (!%p974_p8)  }
  0xbe   : > { %325 = sbr.rel (%p974_p8) target bundleno = 719 (0x2cf), region = 56  ;;  %1045 = vmatprep.subr.bf16.mxu0 (!%p974_p8), %v1559_v1  ;;  %1065 = vmatprep.subr.bf16.mxu1 (!%p974_p8), %v1559_v1  ;;  %v1225_v4 = vld [vmem:[#allocation6 + $0x18] sm:$0xff] (!%p974_p8)   ;;  %v1226_v5 = vld [vmem:[#allocation6 + $0x20] sm:$0xff] (!%p974_p8)   ;;  %v1227_v6 = vld [vmem:[#allocation6 + $0x28] sm:$0xff] (!%p974_p8)  }
  0xbf   : > { %1046 = vmatpush3.bf16.msra.mxu0 (!%p974_p8), %v1222_v0  ;;  %1061 = vmatprep.mubr.msk.bf16.mxu0 (!%p974_p8), %vm1560_vm0, %v1559_v1  ;;  %v1228_v7 = vld [vmem:[#allocation6 + $0x30] sm:$0xff] (!%p974_p8)   ;;  %v1229_v8 = vld [vmem:[#allocation6 + $0x38] sm:$0xff] (!%p974_p8)   ;;  %v975_v12 = vld [vmem:[%s1877_s6] ss:$0 sm:$0xff] (!%p974_p8) }
  0xc0   : > { %1047 = vmatprep.subr.bf16.mxu0 (!%p974_p8), %v1559_v1  ;;  %1066 = vmatpush3.bf16.msra.mxu1 (!%p974_p8), %v1222_v0  ;;  %v343_v9 = vld [vmem:[#allocation3] sm:$0xff] (!%p974_p8)  ;;  %v344_v10 = vld [vmem:[#allocation3 + $0x8] sm:$0xff] (!%p974_p8) }
  0xc1   : > { %1067 = vmatprep.subr.bf16.mxu1 (!%p974_p8), %v1559_v1  ;;  %1081 = vmatprep.mubr.msk.bf16.mxu1 (!%p974_p8), %vm1560_vm0, %v1559_v1  ;;  %v345_v11 = vpack.c.bf16 (!%p974_p8), %v344_v10, %v343_v9 }
  0xc3   : > { %1048 = vmatpush3.bf16.msra.mxu0 (!%p974_p8), %v1223_v2 }
  0xc4   : > { %1049 = vmatprep.subr.bf16.mxu0 (!%p974_p8), %v1559_v1  ;;  %1068 = vmatpush3.bf16.msra.mxu1 (!%p974_p8), %v1223_v2 }
  0xc5   : > { %1069 = vmatprep.subr.bf16.mxu1 %v1559_v1 }
  0xc7   : > { %1050 = vmatpush3.bf16.msra.mxu0 %v1224_v3 }
  0xc8   : > { %1051 = vmatprep.subr.bf16.mxu0 %v1559_v1  ;;  %1070 = vmatpush3.bf16.msra.mxu1 %v1224_v3 }
  0xc9   : > { %1071 = vmatprep.subr.bf16.mxu1 %v1559_v1 }
  0xcb   : > { %1052 = vmatpush3.bf16.msra.mxu0 %v1225_v4 }
  0xcc   : > { %1053 = vmatprep.subr.bf16.mxu0 %v1559_v1  ;;  %1072 = vmatpush3.bf16.msra.mxu1 %v1225_v4 }
  0xcd   : > { %1073 = vmatprep.subr.bf16.mxu1 %v1559_v1 }
  0xcf   : > { %1054 = vmatpush3.bf16.msra.mxu0 %v1226_v5 }
  0xd0   : > { %1055 = vmatprep.subr.bf16.mxu0 %v1559_v1  ;;  %1074 = vmatpush3.bf16.msra.mxu1 %v1226_v5 }
  0xd1   : > { %1075 = vmatprep.subr.bf16.mxu1 %v1559_v1 }
  0xd3   : > { %1056 = vmatpush3.bf16.msra.mxu0 %v1227_v6 }
  0xd4   : > { %1057 = vmatprep.subr.bf16.mxu0 %v1559_v1  ;;  %1076 = vmatpush3.bf16.msra.mxu1 %v1227_v6 }
  0xd5   : > { %1077 = vmatprep.subr.bf16.mxu1 %v1559_v1 }
  0xd7   : > { %1058 = vmatpush3.bf16.msra.mxu0 %v1228_v7 }
  0xd8   : > { %1059 = vmatprep.subr.bf16.mxu0 %v1559_v1  ;;  %1078 = vmatpush3.bf16.msra.mxu1 %v1228_v7 }
  0xd9   : > { %1079 = vmatprep.subr.bf16.mxu1 %v1559_v1 }
  0xdb   : > { %1060 = vmatpush3.bf16.msra.mxu0 %v1229_v8 }
  0xdc   : > { %1080 = vmatpush3.bf16.msra.mxu1 %v1229_v8 }
  0xde   : > { %1062 = vmatmul.mubr.bf16.vlgmr.msra.gmra.mrb[0].mxu0 %v345_v11 }
 0x1b1   : > { %v434_v13 = vpop.f32.mrb[0].mxu0 }
 0x1b2   : > { %v435_v14 = vadd.f32 %v975_v12, %v434_v13  ;;  %v1063_v15 = vpop.f32.mrb[1].mxu0 }
 0x1b3   : > { %v437_v16 = vpop.f32.mrb[2].mxu0 }
 0x1b4   : > { %v984_v17 = vmul.f32 -1.442695, %v435_v14  ;;  %v438_v18 = vadd.f32 %v975_v12, %v437_v16  ;;  %v1064_v19 = vpop.f32.mrb[3].mxu0 }
 0x1b6   : > { %1230 = vpow2.f32 %v984_v17  ;;  %v985_v20 = vmul.f32 -1.442695, %v438_v18 }
 0x1b8   : > { %1232 = vpow2.f32 %v985_v20 }
 0x1c0   : > { %v1231_v21 = vpop.eup %1230 }
 0x1c1   : > { %v447_v22 = vadd.f32 1.0, %v1231_v21 }
 0x1c2   : > { %v1233_v23 = vpop.eup %1232 }
 0x1c3   : > { %1234 = vrcp.f32 %v447_v22  ;;  %v448_v24 = vadd.f32 1.0, %v1233_v23 }
 0x1c5   : > { %1236 = vrcp.f32 %v448_v24 }
 0x1cd   : > { %v1235_v25 = vpop.eup %1234 }
 0x1ce   : > { %v453_v26 = vmul.f32 %v1235_v25, %v435_v14 }
 0x1cf   : > { %v1237_v27 = vpop.eup %1236 }
 0x1d0   : > { %v454_v28 = vmul.f32 %v1237_v27, %v438_v18  ;;  %v455_v29 = vadd.f32 %v453_v26, %v343_v9 }
 0x1d2   : > { %v456_v30 = vadd.f32 %v454_v28, %v344_v10 }
 0x1d4   : > { %v457_v31 = vpack.c.bf16 %v456_v30, %v455_v29 }
 0x1d6   : > { %1082 = vmatmul.mubr.bf16.vlgmr.msra.gmra.mrb[0].mxu1 %v457_v31 }
 0x2a9   : > { %v492_v32 = vpop.f32.mrb[0].mxu1 }
 0x2aa   : > { %v493_v33 = vadd.f32 %v975_v12, %v492_v32  ;;  %v1083_v34 = vpop.f32.mrb[1].mxu1 }
 0x2ab   : > { %v495_v35 = vpop.f32.mrb[2].mxu1 }
 0x2ac   : > { %v986_v36 = vmul.f32 -1.442695, %v493_v33  ;;  %v496_v37 = vadd.f32 %v975_v12, %v495_v35  ;;  %v1084_v38 = vpop.f32.mrb[3].mxu1 }
 0x2ae   : > { %1238 = vpow2.f32 %v986_v36  ;;  %v987_v39 = vmul.f32 -1.442695, %v496_v37 }
 0x2b0   : > { %1240 = vpow2.f32 %v987_v39 }
 0x2b8   : > { %v1239_v40 = vpop.eup %1238 }
 0x2b9   : > { %v505_v41 = vadd.f32 1.0, %v1239_v40 }
 0x2ba   : > { %v1241_v42 = vpop.eup %1240 }
 0x2bb   : > { %1242 = vrcp.f32 %v505_v41  ;;  %v506_v43 = vadd.f32 1.0, %v1241_v42 }
 0x2bd   : > { %1244 = vrcp.f32 %v506_v43 }
 0x2c5   : > { %v1243_v44 = vpop.eup %1242 }
 0x2c6   : > { %v511_v45 = vmul.f32 %v1243_v44, %v493_v33 }
 0x2c7   : > { %v1245_v46 = vpop.eup %1244 }
 0x2c8   : > { %v512_v47 = vmul.f32 %v1245_v46, %v496_v37  ;;  %v513_v48 = vadd.f32 %v511_v45, %v455_v29 }
 0x2ca   : > { %v514_v49 = vadd.f32 %v512_v47, %v456_v30 }
 0x2cc   : > { %v515_v50 = vpack.c.bf16 %v514_v49, %v513_v48 }
 0x2ce   : > { %516 = vst [vmem:[#allocation2] sm:$0xff] %v515_v50 }
 0x2cf PF: > { %v1246_v51 = vld [vmem:[%s1887_s8 + $0x4] ss:$16 sps:$4 sm:$0xff]   ;;  %v1248_v52 = vld [vmem:[%s1887_s8 + $0xc] ss:$16 sps:$4 sm:$0xff]   ;;  %v1561_v53 = vmov 0   ;;  %s2070_s28 = sld [smem:[#allocation18_spill]] }
 0x2d0   : > { %742 = vmatprep.mubr.bf16.mxu0 %v1561_v53  ;;  %785 = vmatprep.mubr.bf16.mxu1 %v1561_v53  ;;  %v1250_v54 = vld [vmem:[%s1887_s8] ss:$16 sps:$4 sm:$0xff]   ;;  %v1251_v55 = vld [vmem:[%s1887_s8 + $0x8] ss:$16 sps:$4 sm:$0xff]   ;;  %v1252_v56 = vld [vmem:[%s1887_s8 + $0x24] ss:$16 sps:$4 sm:$0xff]  }
 0x2d1   : > { %710 = vmatprep.subr.bf16.mxu0 %v1246_v51  ;;  %753 = vmatprep.subr.bf16.mxu1 %v1248_v52  ;;  %v1254_v57 = vld [vmem:[%s1887_s8 + $0x2c] ss:$16 sps:$4 sm:$0xff]   ;;  %v1256_v58 = vld [vmem:[%s1887_s8 + $0x20] ss:$16 sps:$4 sm:$0xff]   ;;  %v1257_v59 = vld [vmem:[%s1887_s8 + $0x28] ss:$16 sps:$4 sm:$0xff]  }
 0x2d2   : > { %711 = vmatpush1.bf16.msra.mxu0 %v1250_v54  ;;  %754 = vmatpush1.bf16.msra.mxu1 %v1251_v55  ;;  %v1258_v60 = vld [vmem:[%s1887_s8 + $0x44] ss:$16 sps:$4 sm:$0xff]   ;;  %v1260_v61 = vld [vmem:[%s1887_s8 + $0x4c] ss:$16 sps:$4 sm:$0xff]   ;;  %v1262_v62 = vld [vmem:[%s1887_s8 + $0x40] ss:$16 sps:$4 sm:$0xff]  }
 0x2d3   : > { %712 = vmatprep.subr.bf16.mxu0 %v1252_v56  ;;  %755 = vmatprep.subr.bf16.mxu1 %v1254_v57  ;;  %v1263_v63 = vld [vmem:[%s1887_s8 + $0x48] ss:$16 sps:$4 sm:$0xff]   ;;  %v1264_v0 = vld [vmem:[%s1887_s8 + $0x64] ss:$16 sps:$4 sm:$0xff]   ;;  %v1266_v1 = vld [vmem:[%s1887_s8 + $0x6c] ss:$16 sps:$4 sm:$0xff]  }
 0x2d4   : > { %v1268_v2 = vld [vmem:[%s1887_s8 + $0x60] ss:$16 sps:$4 sm:$0xff]   ;;  %v1269_v3 = vld [vmem:[%s1887_s8 + $0x68] ss:$16 sps:$4 sm:$0xff]   ;;  %v1270_v4 = vld [vmem:[%s1887_s8 + $0x84] ss:$16 sps:$4 sm:$0xff]  }
 0x2d5   : > { %v1272_v5 = vld [vmem:[%s1887_s8 + $0x8c] ss:$16 sps:$4 sm:$0xff]   ;;  %v1274_v6 = vld [vmem:[%s1887_s8 + $0x80] ss:$16 sps:$4 sm:$0xff]   ;;  %v1275_v7 = vld [vmem:[%s1887_s8 + $0x88] ss:$16 sps:$4 sm:$0xff]  }
 0x2d6   : > { %713 = vmatpush1.bf16.msra.mxu0 %v1256_v58  ;;  %756 = vmatpush1.bf16.msra.mxu1 %v1257_v59  ;;  %v1276_v8 = vld [vmem:[%s1887_s8 + $0xa4] ss:$16 sps:$4 sm:$0xff]   ;;  %v1278_v9 = vld [vmem:[%s1887_s8 + $0xac] ss:$16 sps:$4 sm:$0xff]   ;;  %v1280_v10 = vld [vmem:[%s1887_s8 + $0xa0] ss:$16 sps:$4 sm:$0xff]  }
 0x2d7   : > { %714 = vmatprep.subr.bf16.mxu0 %v1258_v60  ;;  %757 = vmatprep.subr.bf16.mxu1 %v1260_v61  ;;  %v1281_v11 = vld [vmem:[%s1887_s8 + $0xa8] ss:$16 sps:$4 sm:$0xff]   ;;  %v1282_v12 = vld [vmem:[%s1887_s8 + $0xc4] ss:$16 sps:$4 sm:$0xff]   ;;  %v1284_v13 = vld [vmem:[%s1887_s8 + $0xcc] ss:$16 sps:$4 sm:$0xff]  }
 0x2d8   : > { %v1286_v14 = vld [vmem:[%s1887_s8 + $0xc0] ss:$16 sps:$4 sm:$0xff]   ;;  %v1287_v15 = vld [vmem:[%s1887_s8 + $0xc8] ss:$16 sps:$4 sm:$0xff]   ;;  %v1288_v16 = vld [vmem:[%s1887_s8 + $0xe4] ss:$16 sps:$4 sm:$0xff]  }
 0x2d9   : > { %v1290_v17 = vld [vmem:[%s1887_s8 + $0xec] ss:$16 sps:$4 sm:$0xff]   ;;  %v1292_v18 = vld [vmem:[%s1887_s8 + $0xe0] ss:$16 sps:$4 sm:$0xff]   ;;  %v1293_v19 = vld [vmem:[%s1887_s8 + $0xe8] ss:$16 sps:$4 sm:$0xff]  }
 0x2da   : > { %715 = vmatpush1.bf16.msra.mxu0 %v1262_v62  ;;  %758 = vmatpush1.bf16.msra.mxu1 %v1263_v63  ;;  %v517_v20 = vld [vmem:[#allocation2] sm:$0xff]  ;;  %s1021_s16 = sshll.u32 %s2070_s28, 2  ;;  %s1022_s30 = sshll.u32 %s1534_s22, 4 }
 0x2db   : > { %716 = vmatprep.subr.bf16.mxu0 %v1264_v0  ;;  %759 = vmatprep.subr.bf16.mxu1 %v1266_v1  ;;  %s820_s7 = sadd.s32 %s1022_s30, %s1021_s16  ;;  %s823_s29 = sshll.u32 %s1894_s1, 4  ;;  %s1940_s29 = int_to_ptr.vmem [resolvable:$true] %s823_s29 }
 0x2dc   : > { %s1023_s27 = sshll.u32 %s820_s7, 7  ;;  %s2071_s12 = sld [smem:[#allocation27_spill]] }
 0x2dd   : > { %s2072_s2 = sld [smem:[#allocation20_spill]]  ;;  %s805_s22 = scalar_lea.sflag [#allocation5], %s1884_s10 }
 0x2de   : > { %717 = vmatpush1.bf16.msra.mxu0 %v1268_v2  ;;  %760 = vmatpush1.bf16.msra.mxu1 %v1269_v3  ;;  %s1412_s21 = scalar_lea.vmem %s1940_s29, 1024  ;;  %s1562_s6 = smov [#allocation10]  }
 0x2df   : > { %718 = vmatprep.subr.bf16.mxu0 %v1270_v4  ;;  %761 = vmatprep.subr.bf16.mxu1 %v1272_v5  ;;  %p1413_p13 = scmp.ne.s32.totalorder %s1940_s29, %s1412_s21  ;;  %s1416_s13 = sshll.u32 %s1562_s6, 4  ;;  %s1417_s13 = int_to_ptr.vmem [resolvable:$false] %s1416_s13 }
 0x2e0   : > { %s1418_s5 = scalar_lea.vmem %s1417_s13, 2048  ;;  %p1419_p9 = scmp.lt.s32.totalorder %s1940_s29, %s1417_s13 }
 0x2e1   : > { %p1420_p12 = scmp.lt.s32.totalorder %s1418_s5, %s1412_s21 }
 0x2e2   : > { %719 = vmatpush1.bf16.msra.mxu0 %v1274_v6  ;;  %762 = vmatpush1.bf16.msra.mxu1 %v1275_v7  ;;  %s1936_s4 = scalar_lea.hbm %s2071_s12, %s1023_s27 }
 0x2e3   : > { %720 = vmatprep.subr.bf16.mxu0 %v1276_v8  ;;  %763 = vmatprep.subr.bf16.mxu1 %v1278_v9  ;;  %p2073_p7 = scmp.ne.s32.totalorder %s2072_s2, 0  ;;  %p1421_p11 = por %p1420_p12, %p1419_p9 }
 0x2e5   : > { %p1414_p0 = pnand %p1413_p13, %p2073_p7 }
 0x2e6   : > { %721 = vmatpush1.bf16.msra.mxu0 %v1280_v10  ;;  %764 = vmatpush1.bf16.msra.mxu1 %v1281_v11 }
 0x2e7   : > { %722 = vmatprep.subr.bf16.mxu0 %v1282_v12  ;;  %765 = vmatprep.subr.bf16.mxu1 %v1284_v13  ;;  %p1415_p3 = pneg %p1414_p0 }
 0x2e9   : > { %p1422_p1 = pnand %p1421_p11, %p1415_p3 }
 0x2ea   : > { %723 = vmatpush1.bf16.msra.mxu0 %v1286_v14  ;;  %766 = vmatpush1.bf16.msra.mxu1 %v1287_v15 }
 0x2eb   : > { %724 = vmatprep.subr.bf16.mxu0 %v1288_v16  ;;  %767 = vmatprep.subr.bf16.mxu1 %v1290_v17 }
 0x2ee   : > { %725 = vmatpush1.bf16.msra.mxu0 %v1292_v18  ;;  %768 = vmatpush1.bf16.msra.mxu1 %v1293_v19 }
 0x2f1   : > { %743 = vmatmul.mubr.bf16.vlgmr.msra.gmra.mrb[0].mxu0 %v517_v20  ;;  %786 = vmatmul.mubr.bf16.vlgmr.msra.gmra.mrb[0].mxu1 %v517_v20 }
 0x3c4   : > { %v744_v21 = vpop.f32.mrb[0].mxu0  ;;  %v787_v22 = vpop.f32.mrb[0].mxu1 }
 0x3c5   : > { %796 = vst [vmem:[%s1894_s1] sm:$0xff] %v744_v21  ;;  %798 = vst [vmem:[%s1894_s1 + $0x10] sm:$0xff] %v787_v22  ;;  %v746_v23 = vpop.f32.mrb[1].mxu0  ;;  %v789_v24 = vpop.f32.mrb[1].mxu1 }
 0x3c6   : > { %797 = vst [vmem:[%s1894_s1 + $0x8] sm:$0xff] %v746_v23  ;;  %799 = vst [vmem:[%s1894_s1 + $0x18] sm:$0xff] %v789_v24  ;;  %v748_v25 = vpop.f32.mrb[2].mxu0  ;;  %v791_v26 = vpop.f32.mrb[2].mxu1 }
 0x3c7   : > { %800 = vst [vmem:[%s1894_s1 + $0x20] sm:$0xff] %v748_v25  ;;  %802 = vst [vmem:[%s1894_s1 + $0x30] sm:$0xff] %v791_v26  ;;  %v750_v27 = vpop.f32.mrb[3].mxu0  ;;  %v793_v28 = vpop.f32.mrb[3].mxu1 }
 0x3c8   : > { %801 = vst [vmem:[%s1894_s1 + $0x28] sm:$0xff] %v750_v27  ;;  %803 = vst [vmem:[%s1894_s1 + $0x38] sm:$0xff] %v793_v28 }
 0x3c9   : > { %1425 = shalt.err (!%p1422_p1)
}
 0x3ca   : > { %s1426_s9 = scalar_lea.hbm %s1936_s4, 1024  ;;  %s1430_s1 = scalar_lea.hbm %s2071_s12, 4096 }
 0x3cb   : > { %p1427_p10 = scmp.ne.s32.totalorder %s1936_s4, %s1426_s9  ;;  %p1431_p6 = scmp.lt.u32.totalorder %s1936_s4, %s2071_s12 }
 0x3cc   : > { %p1432_p2 = scmp.lt.u32.totalorder %s1430_s1, %s1426_s9  ;;  %p1434_p13 = scmp.lt.u32.totalorder %s1426_s9, %s1936_s4 }
 0x3cd   : > { %p1428_p5 = pnand %p1427_p10, %p2073_p7 }
 0x3ce   : > { %p1433_p8 = por %p1432_p2, %p1431_p6 }
 0x3cf   : > { %p1429_p4 = pneg %p1428_p5 }
 0x3d0   : > { %p1435_p0 = por %p1434_p13, %p1433_p8 }
 0x3d2   : > { %p1436_p3 = pnand %p1435_p0, %p1429_p4 }
 0x3d4   : > { %1439 = shalt.err (!%p1436_p3)
}
 0x3d5   : > { %s1563_s16 = smov 512   ;;  %s1564_s30 = smov 1024  }
 0x3d6   : > { %s1565_s7 = smov 32  }
 0x3d7   : > { %1095 = dma.vmem_to_hbm [thread:$0]  (%p2073_p7), %s1940_s29, 1024, %s1936_s4, %s805_s22, %s1563_s16, %s1564_s30, %s1565_s7  }
 0x3d8 PF: > { %s2074_s27 = sld [smem:[#allocation16_spill]]  ;;  %s2075_s18 = sld [smem:[#allocation21_spill]] }
 0x3d9   : > { %p1118_p9 = scmp.ge.s32.totalorder %s1546_s25, 2 }
 0x3de   : > { %s838_s11 = sand.u32 1, %s2074_s27   ;;  %p2076_p12 = scmp.ne.s32.totalorder %s2075_s18, 0 }
 0x3df   : > { %s839_s21 = scalar_lea.sflag [#allocation5], %s838_s11 }
 0x3e0   : > { %p1112_p11 = pnand %p1118_p9, %p2076_p12 }
 0x3e2   : > { %1501 = dma.done.wait (!%p1112_p11), %s839_s21, 1024  }
 0x3e3   : > { %1503 = vsyncadd (!%p1112_p11), %s839_s21, 4294966272  ;;  %s19_s25 = sadd.s32 1, %s1546_s25   ;;  %s2077_s6 = sld [smem:[#allocation17_spill]] }
 0x3e4   : > { %p16_p1 = scmp.ge.s32.totalorder %s19_s25, 6   ;;  %s2078_s13 = smov %s1748_s15 }
 0x3e5   : > { %s2079_s10 = sld [smem:[#allocation22_spill]]  ;;  %s2080_s29 = sld [smem:[#allocation23_spill]] }
 0x3e6   : > { %s2082_s16 = smov %s1514_s17  ;;  %s2083_s17 = smov %s2078_s13 }
 0x3e7   : > { %s2084_s18 = smov %s1522_s19  ;;  %s2085_s19 = smov %s1526_s20 }
 0x3e8   : > { %s2086_s20 = smov %s1745_s14  ;;  %s2087_s21 = smov %s1538_s23 }
 0x3e9   : > { %s2081_s15 = smov %s2077_s6  ;;  %s2088_s22 = smov %s1542_s24 }
 0x3ea   :  { %18 = sbr.rel (!%p16_p1) target bundleno = 14 (0xe), region = 105 }
 0x3eb   : > { %s2089_s23 = smov %s2079_s10  ;;  %s2090_s24 = smov %s2080_s29 }
 0x3f1   :  { %844 = vsyncpa [#allocation4], 1 }
 0x3f2   :  { %846 = vsyncpa [#allocation4 + $0x1], 1 }
 0x3f3   :  { %847 = vsyncpa [#allocation7], 1 }
 0x3f4   :  { %848 = vsyncpa [#allocation5], 1 }
 0x3f5   :  { %850 = vsyncpa [#allocation5 + $0x1], 1 }

</bundles_post_ra>
